<compile_context>
chip_gen: v5e
topology: v5e:2x2
jax: 0.10.0
libtpu: 0.0.40
codegen_flags: <defaults>
</compile_context>

<pallas_src>
import functools

import jax
import jax.numpy as jnp
from jax.experimental import pallas as pl
from jax.experimental.pallas import tpu as pltpu


def _constraint_kernel(w_ref, b_ref, xT_ref, o_ref):
    # w_ref: (in_dim,) f32 SMEM, b_ref: (1,) f32 SMEM
    # xT_ref: (in_dim, 8, TBC) VMEM (native input dtype)
    # o_ref:  (8, TBC) f32 VMEM
    in_dim = xT_ref.shape[0]
    # Unrolled VPU FMA chain over the tiny static in_dim; each term is a full
    # sublane/lane-dense (8, TBC) slab.
    acc = xT_ref[0].astype(jnp.float32) * w_ref[0]
    for k in range(1, in_dim):
        acc = acc + xT_ref[k].astype(jnp.float32) * w_ref[k]
    y = acc + b_ref[0]                                 # (8, TBC)
    # forward activation: log(relu(y) + 1) == log1p(max(y, 0))
    o_ref[...] = jnp.log1p(jnp.maximum(y, 0.0))


def _round_up(a: int, m: int) -> int:
    return ((a + m - 1) // m) * m


@functools.partial(jax.jit, static_argnames=("in_dim", "tile_cols"))
def constraint_forward(inputs, weight, bias, in_dim, tile_cols=None):
    """inputs: (B, ...) ; weight: (1, in_dim) (PyTorch layout); bias: (1,)."""
    B = inputs.shape[0]
    flat = inputs.reshape(B, -1)
    assert flat.shape[1] >= in_dim, "flattened input must have >= in_dim features"

    # Slice first (native dtype), cast only non-float inputs on the host.
    net_in = flat[:, -in_dim:]                          # (B, in_dim)
    if not jnp.issubdtype(net_in.dtype, jnp.floating):
        net_in = net_in.astype(jnp.float32)

    # Tiny pad so the batch can be split sublane-dense (at most 7 extra rows).
    B8 = _round_up(B, 8)
    if B8 != B:
        net_in = jnp.pad(net_in, ((0, B8 - B), (0, 0)))
    C = B8 // 8
    # (in_dim, B8) -> (in_dim, 8, C): minor-dim split is free; batch index
    # b maps to (sublane s, column c) with b = s*C + c (row-major).
    xT = net_in.T.reshape(in_dim, 8, C)

    itemsize = xT.dtype.itemsize
    if tile_cols is None:
        # ~4 MiB input block -> ~10 MiB double-buffered VMEM (fits all gens).
        target_bytes = 4 * 1024 * 1024
        tbc = max(128, (target_bytes // (in_dim * 8 * itemsize)) // 128 * 128)
    else:
        tbc = _round_up(tile_cols, 128)
    # Never allocate a block much larger than the array itself.
    tbc = min(tbc, _round_up(C, 128))
    # v7x megacore: aim for >= 2 grid steps when there is enough work.
    if C > 128 and pl.cdiv(C, tbc) < 2:
        tbc = max(128, _round_up(pl.cdiv(C, 2), 128))
    num_tiles = pl.cdiv(C, tbc)                         # ragged last block OK

    w = weight.reshape(in_dim).astype(jnp.float32)      # SMEM scalars
    b = bias.reshape(1).astype(jnp.float32)

    out = pl.pallas_call(
        _constraint_kernel,
        out_shape=jax.ShapeDtypeStruct((8, C), jnp.float32),
        grid=(num_tiles,),
        in_specs=[
            pl.BlockSpec(memory_space=pltpu.MemorySpace.SMEM),     # weight (in_dim,)
            pl.BlockSpec(memory_space=pltpu.MemorySpace.SMEM),     # bias (1,)
            pl.BlockSpec((in_dim, 8, tbc), lambda i: (0, 0, i)),   # xT tile
        ],
        out_specs=pl.BlockSpec((8, tbc), lambda i: (0, i)),
        compiler_params=pltpu.CompilerParams(
            dimension_semantics=("parallel",),
        ),
        cost_estimate=pl.CostEstimate(
            flops=2 * B8 * in_dim,
            transcendentals=B8,
            bytes_accessed=itemsize * B8 * in_dim + 4 * B8,
        ),
    )(w, b, xT)
    # (8, C) row-major flatten recovers the original batch order.
    return out.reshape(-1)[:B]                          # (B,)


def constraint_forward_ref(inputs, weight, bias, in_dim):
    """Plain-JAX reference for correctness check."""
    B = inputs.shape[0]
    net_in = inputs.reshape(B, -1)[:, -in_dim:].astype(jnp.float32)
    y = net_in @ weight.reshape(in_dim, 1).astype(jnp.float32) \
        + bias.astype(jnp.float32).reshape(1)
    return jnp.log(jnp.maximum(y, 0.0) + 1.0).reshape(-1)


if __name__ == "__main__":
    key = jax.random.PRNGKey(0)
    k_w, k_b, k1, k2, k3 = jax.random.split(key, 5)

    in_dim = 4
    # Deterministic synthetic Linear(in_dim, 1) parameters (PyTorch layout (1, in_dim)).
    weight = jax.random.uniform(k_w, (1, in_dim), jnp.float32, -1.0, 1.0)
    bias = jax.random.uniform(k_b, (1,), jnp.float32, -1.0, 1.0)

    # Case 1: tiny trajectory batch (B, T, obs_dim), f32; single ragged block (C=1).
    x1 = jax.random.normal(k1, (8, 4, 4), jnp.float32)
    o1 = jax.block_until_ready(constraint_forward(x1, weight, bias, in_dim))
    r1 = constraint_forward_ref(x1, weight, bias, in_dim)
    assert o1.shape == (8,)
    assert jnp.allclose(o1, r1, atol=1e-5, rtol=1e-5)

    # Case 2: B % 8 != 0 and bf16 inputs (native-dtype slice/transpose, upcast in kernel).
    x2 = jax.random.normal(k2, (300, 3, 4), jnp.float32).astype(jnp.bfloat16)
    o2 = jax.block_until_ready(constraint_forward(x2, weight, bias, in_dim))
    r2 = constraint_forward_ref(x2, weight, bias, in_dim)
    assert o2.shape == (300,)
    assert jnp.allclose(o2, r2, atol=1e-5, rtol=1e-5)

    # Case 3: multi-tile grid with a ragged last block (tile_cols override).
    x3 = jax.random.normal(k3, (2056, 4), jnp.float32)
    o3 = jax.block_until_ready(
        constraint_forward(x3, weight, bias, in_dim, tile_cols=128))
    r3 = constraint_forward_ref(x3, weight, bias, in_dim)
    assert o3.shape == (2056,)
    assert jnp.allclose(o3, r3, atol=1e-5, rtol=1e-5)

    print("KERNEL_OK")
</pallas_src>

<mosaic_0001>
module attributes {stable_mosaic.version = 11 : i64} {
  func.func @_constraint_kernel(%arg0: i32, %arg1: memref<4xf32, #tpu.memory_space<smem>>, %arg2: memref<1xf32, #tpu.memory_space<smem>>, %arg3: memref<4x8x128xf32, #tpu.memory_space<vmem>>, %arg4: memref<8x128xf32, #tpu.memory_space<vmem>>) attributes {dimension_semantics = [#tpu.dimension_semantics<parallel>], iteration_bounds = array<i64: 1>, scalar_prefetch = 0 : i64, scratch_operands = 0 : i64, tpu.core_type = #tpu.core_type<tc>, window_params = [{transform_indices = @transform_0, window_bounds = array<i64: 4>}, {transform_indices = @transform_1, window_bounds = array<i64: 1>}, {transform_indices = @transform_2, window_bounds = array<i64: 4, 8, 128>}, {transform_indices = @transform_3, window_bounds = array<i64: 8, 128>}]} {
    %c0 = arith.constant 0 : index
    %c0_0 = arith.constant 0 : index
    %c0_1 = arith.constant 0 : index
    %0 = vector.load %arg3[%c0, %c0_0, %c0_1] : memref<4x8x128xf32, #tpu.memory_space<vmem>>, vector<1x8x128xf32>
    %1 = vector.shape_cast %0 : vector<1x8x128xf32> to vector<8x128xf32>
    %c0_2 = arith.constant 0 : index
    %2 = memref.load %arg1[%c0_2] : memref<4xf32, #tpu.memory_space<smem>>
    %3 = vector.broadcast %2 : f32 to vector<8x128xf32>
    %4 = arith.mulf %1, %3 : vector<8x128xf32>
    %c1 = arith.constant 1 : index
    %c0_3 = arith.constant 0 : index
    %c0_4 = arith.constant 0 : index
    %5 = vector.load %arg3[%c1, %c0_3, %c0_4] : memref<4x8x128xf32, #tpu.memory_space<vmem>>, vector<1x8x128xf32>
    %6 = vector.shape_cast %5 : vector<1x8x128xf32> to vector<8x128xf32>
    %c1_5 = arith.constant 1 : index
    %7 = memref.load %arg1[%c1_5] : memref<4xf32, #tpu.memory_space<smem>>
    %8 = vector.broadcast %7 : f32 to vector<8x128xf32>
    %9 = arith.mulf %6, %8 : vector<8x128xf32>
    %10 = arith.addf %4, %9 : vector<8x128xf32>
    %c2 = arith.constant 2 : index
    %c0_6 = arith.constant 0 : index
    %c0_7 = arith.constant 0 : index
    %11 = vector.load %arg3[%c2, %c0_6, %c0_7] : memref<4x8x128xf32, #tpu.memory_space<vmem>>, vector<1x8x128xf32>
    %12 = vector.shape_cast %11 : vector<1x8x128xf32> to vector<8x128xf32>
    %c2_8 = arith.constant 2 : index
    %13 = memref.load %arg1[%c2_8] : memref<4xf32, #tpu.memory_space<smem>>
    %14 = vector.broadcast %13 : f32 to vector<8x128xf32>
    %15 = arith.mulf %12, %14 : vector<8x128xf32>
    %16 = arith.addf %10, %15 : vector<8x128xf32>
    %c3 = arith.constant 3 : index
    %c0_9 = arith.constant 0 : index
    %c0_10 = arith.constant 0 : index
    %17 = vector.load %arg3[%c3, %c0_9, %c0_10] : memref<4x8x128xf32, #tpu.memory_space<vmem>>, vector<1x8x128xf32>
    %18 = vector.shape_cast %17 : vector<1x8x128xf32> to vector<8x128xf32>
    %c3_11 = arith.constant 3 : index
    %19 = memref.load %arg1[%c3_11] : memref<4xf32, #tpu.memory_space<smem>>
    %20 = vector.broadcast %19 : f32 to vector<8x128xf32>
    %21 = arith.mulf %18, %20 : vector<8x128xf32>
    %22 = arith.addf %16, %21 : vector<8x128xf32>
    %c0_12 = arith.constant 0 : index
    %23 = memref.load %arg2[%c0_12] : memref<1xf32, #tpu.memory_space<smem>>
    %24 = vector.broadcast %23 : f32 to vector<8x128xf32>
    %25 = arith.addf %22, %24 : vector<8x128xf32>
    %cst = arith.constant 0.000000e+00 : f32
    %26 = vector.broadcast %cst : f32 to vector<8x128xf32>
    %27 = arith.maximumf %25, %26 : vector<8x128xf32>
    %28 = math.log1p %27 : vector<8x128xf32>
    %c0_13 = arith.constant 0 : index
    %c0_14 = arith.constant 0 : index
    %29 = vector.load %arg4[%c0_13, %c0_14] : memref<8x128xf32, #tpu.memory_space<vmem>>, vector<8x128xf32>
    tpu.vector_store %arg4[%c0_13, %c0_14], %28 {strides = array<i32>} : memref<8x128xf32, #tpu.memory_space<vmem>>, vector<8x128xf32>,
    return
  }
  func.func @transform_0(%arg0: i32) -> i32 {
    %c0_i32 = arith.constant 0 : i32
    %c0_i32_0 = arith.constant 0 : i32
    return %c0_i32 : i32
  }
  func.func @transform_1(%arg0: i32) -> i32 {
    %c0_i32 = arith.constant 0 : i32
    %c0_i32_0 = arith.constant 0 : i32
    return %c0_i32 : i32
  }
  func.func @transform_2(%arg0: i32) -> (i32, i32, i32) {
    %c0_i32 = arith.constant 0 : i32
    %c0_i32_0 = arith.constant 0 : i32
    %c0_i32_1 = arith.constant 0 : i32
    return %c0_i32, %c0_i32_0, %arg0 : i32, i32, i32
  }
  func.func @transform_3(%arg0: i32) -> (i32, i32) {
    %c0_i32 = arith.constant 0 : i32
    %c0_i32_0 = arith.constant 0 : i32
    return %c0_i32, %arg0 : i32, i32
  }
}

</mosaic_0001>

<bundles_post_ra>
// kernel: constraint_forward.1
= control target key start
LH: loop header
LB: loop body
LE: loop exit
PB: predicated region body
PF: predicated region fallthrough
CT: control target
= control target key end

     0   :  { %9 = vsyncpa [#allocation4], 0  ;;  %s92_s15 = smov [#allocation3]   ;;  %s134_s0 = inlined_call_operand.vmem [shape: f32[4], index: 0, kind: input, shape index: {}]   ;;  %s135_s1 = inlined_call_operand.<no memory space> [shape: f32[1], index: 1, kind: input, shape index: {}]   ;;  %s136_s2 = inlined_call_operand.vmem [shape: f32[4,8,1], index: 2, kind: input, shape index: {}]   ;;  %s137_s3 = inlined_call_operand.vmem [shape: f32[8,1], index: 3, kind: output, shape index: {}]  }
   0x1   :  { %s15_s14 = sshll.u32 %s134_s0, 4  ;;  %s16_s14 = int_to_ptr.vmem [resolvable:$true] %s15_s14 }
   0x2   :  { %18 = dma.vmem_to_smem %s16_s14, 16, %s92_s15, [#allocation4]  }
   0x3   :  { %90 = dma.done.wait [#allocation4], 16  }
   0x4   :  { %91 = vsyncadd [#allocation4], 4294967280 }
   0x5   :  { %27 = sfence }
   0x6   :  { %s29_s16 = sld [smem:[#allocation3]]  ;;  %v28_v0 = vld [vmem:[%s136_s2] sm:$0xff]  ;;  %v69_v1 = vld [vmem:[%s136_s2 + $0x8] sm:$0xff]  ;;  %v71_v3 = vld [vmem:[%s136_s2 + $0x10] sm:$0xff]  ;;  %v51_v14 = vstv %s135_s1 }
   0x7   :  { %s70_s17 = sld [smem:[#allocation3 + $0x1]]  ;;  %v73_v6 = vld [vmem:[%s136_s2 + $0x18] sm:$0xff] }
   0x8   :  { %s72_s18 = sld [smem:[#allocation3 + $0x2]] }
   0x9   :  { %s74_s19 = sld [smem:[#allocation3 + $0x3]] }
   0xc   :  { %v30_v2 = vstv %s29_s16 }
   0xd   :  { %v31_v4 = vmul.f32 %v30_v2, %v28_v0  ;;  %v35_v5 = vstv %s70_s17 }
   0xe   :  { %v36_v7 = vmul.f32 %v69_v1, %v35_v5  ;;  %v41_v8 = vstv %s72_s18 }
   0xf   :  { %v42_v9 = vmul.f32 %v71_v3, %v41_v8  ;;  %v47_v10 = vstv %s74_s19 }
  0x10   :  { %v37_v11 = vadd.f32 %v36_v7, %v31_v4  ;;  %v48_v12 = vmul.f32 %v73_v6, %v47_v10 }
  0x12   :  { %v43_v13 = vadd.f32 %v42_v9, %v37_v11 }
  0x14   :  { %v49_v15 = vadd.f32 %v48_v12, %v43_v13 }
  0x16   :  { %v52_v16 = vadd.f32 %v51_v14, %v49_v15 }
  0x18   :  { %v53_v17 = vmax.f32 %v52_v16, 0.0 }
  0x1a   :  { %v54_v18 = vadd.f32 1.0, %v53_v17  ;;  %v57_v19 = vmul.f32 -0.5, %v53_v17  ;;  %v60_v21 = vand.u32 2147483647, %v53_v17 }
  0x1c   :  { %76 = vlog2.f32 %v54_v18  ;;  %v58_v20 = vadd.f32 1.0, %v57_v19  ;;  %vm61_vm0 = vcmp.lt.f32.partialorder %v60_v21, 0.0004427343 }
  0x1e   :  { %v59_v22 = vmul.f32 %v58_v20, %v53_v17 }
  0x22   :  { %v77_v23 = vpop.eup %76 }
  0x23   :  { %v56_v24 = vmul.f32 0.6931472, %v77_v23 }
  0x25   :  { %v62_v25 = vsel %vm61_vm0, %v59_v22, %v56_v24 }
  0x26   :  { %63 = vst [vmem:[%s137_s3] sm:$0xff] %v62_v25 }
  0x27   :  { %68 = vsyncpa [#allocation4], 1 }

</bundles_post_ra>
